<compile_context>
chip_gen: v7x
topology: tpu7x:2x2x1
jax: 0.10.0
libtpu: 0.0.40
codegen_flags: <defaults>
</compile_context>

<pallas_src>
import functools

import jax
import jax.numpy as jnp
from jax.experimental import pallas as pl
from jax.experimental.pallas import tpu as pltpu

EPS = 1e-5


def _round_up(x, n):
    return (x + n - 1) // n * n


# ---------------------------- Pallas kernels ----------------------------

def _conv_stats_y_kernel(w_ref, p_ref, y_ref, stats_ref):
    # w_ref: (Cp, Kp)  p_ref: (1, Kp, tm)  y_ref: (1, Cp, tm)
    # stats_ref: (1, 1, Cp, 2): [:, 0]=sum_col y, [:, 1]=sum_col y^2  (f32)
    y = jnp.dot(w_ref[...], p_ref[0], preferred_element_type=jnp.float32)
    stats_ref[0, 0] = jnp.concatenate(
        [jnp.sum(y, axis=1, keepdims=True),
         jnp.sum(y * y, axis=1, keepdims=True)], axis=1)
    y_ref[0] = y.astype(y_ref.dtype)


def _conv_stats_kernel(w_ref, p_ref, stats_ref):
    # Stats-only pass 1 (recompute path): y never touches HBM.
    y = jnp.dot(w_ref[...], p_ref[0], preferred_element_type=jnp.float32)
    stats_ref[0, 0] = jnp.concatenate(
        [jnp.sum(y, axis=1, keepdims=True),
         jnp.sum(y * y, axis=1, keepdims=True)], axis=1)


def _bn_lrelu_kernel(scale_ref, shift_ref, y_ref, o_ref, *, slope):
    # scale/shift: (Cp, 1) f32;  y_ref: (1, Cp, tm) compute dtype.
    z = scale_ref[...] * y_ref[0].astype(jnp.float32) + shift_ref[...]
    o_ref[0] = jnp.where(z >= 0, z, slope * z).astype(o_ref.dtype)


def _conv_bn_lrelu_kernel(w_ref, p_ref, scale_ref, shift_ref, o_ref, *, slope):
    # Recompute path pass 2: redo the small GEMM, then normalize + LeakyReLU.
    y = jnp.dot(w_ref[...], p_ref[0], preferred_element_type=jnp.float32)
    z = scale_ref[...] * y + shift_ref[...]
    o_ref[0] = jnp.where(z >= 0, z, slope * z).astype(o_ref.dtype)


# ------------------------------ wrapper ---------------------------------

@functools.partial(jax.jit, static_argnames=(
    "stride", "padding", "slope", "tile_m", "compute_dtype", "store_y"))
def conv_block_forward(x, weight, bias, gamma, beta, *, stride=2, padding=1,
                       slope=0.2, tile_m=4096, compute_dtype=jnp.bfloat16,
                       store_y=None):
    """x: [N, Cin, H, W] (NCHW).  weight: [Cout, Cin, kh, kw] (PyTorch OIHW)."""
    del bias  # Cancels exactly in (y - mean(y)) under train-mode BatchNorm.

    n, cin, h, w = x.shape
    cout, _, kh, kw = weight.shape
    oh = (h + 2 * padding - kh) // stride + 1
    ow = (w + 2 * padding - kw) // stride + 1
    m_img = oh * ow
    k = cin * kh * kw

    pack = 2 if jnp.dtype(compute_dtype).itemsize == 2 else 1
    kp = _round_up(k, 8 * pack)           # 16-aligned sublanes for bf16 packing
    cp = _round_up(cout, 8)

    # Per-image M tiling (lets the output land directly in NCHW order).
    if m_img <= 128:
        tm = m_img                        # block == full array dim is allowed
    else:
        n_tiles = -(-m_img // max(_round_up(tile_m, 128), 128))
        tm = _round_up(-(-m_img // n_tiles), 128)
    m_img_p = _round_up(m_img, tm)
    grid_j = m_img_p // tm
    m_total = n * m_img

    # ---- glue: compute-dtype im2col in per-image layout [N, Kp, Mimg_p] ----
    x_c = x.astype(compute_dtype)
    x_pad = jnp.pad(x_c, ((0, 0), (0, 0), (padding, padding), (padding, padding)))
    cols = []
    for dh in range(kh):
        for dw in range(kw):
            cols.append(x_pad[:, :, dh:dh + stride * oh:stride,
                              dw:dw + stride * ow:stride])       # [N, Cin, OH, OW]
    # K ordering (cin, dh, dw) matches weight.reshape(Cout, Cin*kh*kw).
    patches = jnp.stack(cols, axis=2).reshape(n, k, m_img)
    patches_p = jnp.pad(patches, ((0, 0), (0, kp - k), (0, m_img_p - m_img)))
    w_p = jnp.pad(weight.reshape(cout, k).astype(compute_dtype),
                  ((0, cp - cout), (0, kp - k)))

    y_dtype = compute_dtype
    if store_y is None:
        # Store y iff its HBM write+read is cheaper than re-reading patches.
        store_y = (2 * cp * jnp.dtype(y_dtype).itemsize
                   <= kp * jnp.dtype(compute_dtype).itemsize)

    cparams = pltpu.CompilerParams(
        dimension_semantics=("parallel", "parallel"),   # megacore on v7x
        vmem_limit_bytes=48 << 20)

    grid = (n, grid_j)
    w_spec = pl.BlockSpec((cp, kp), lambda b, j: (0, 0))
    p_spec = pl.BlockSpec((1, kp, tm), lambda b, j: (b, 0, j))
    y_spec = pl.BlockSpec((1, cp, tm), lambda b, j: (b, 0, j))
    stats_spec = pl.BlockSpec((1, 1, cp, 2), lambda b, j: (b, j, 0, 0))
    vec_spec = pl.BlockSpec((cp, 1), lambda b, j: (0, 0))
    stats_shape = jax.ShapeDtypeStruct((n, grid_j, cp, 2), jnp.float32)

    # ---- pass 1: conv GEMM tiles + streamed per-channel partial stats ----
    if store_y:
        y, stats = pl.pallas_call(
            _conv_stats_y_kernel,
            out_shape=(jax.ShapeDtypeStruct((n, cp, m_img_p), y_dtype),
                       stats_shape),
            grid=grid,
            in_specs=[w_spec, p_spec],
            out_specs=(y_spec, stats_spec),
            compiler_params=cparams,
        )(w_p, patches_p)
    else:
        stats = pl.pallas_call(
            _conv_stats_kernel,
            out_shape=stats_shape,
            grid=grid,
            in_specs=[w_spec, p_spec],
            out_specs=stats_spec,
            compiler_params=cparams,
        )(w_p, patches_p)

    # ---- tiny O(Cout) glue: fold batch stats into per-channel scale/shift ----
    # (Padded K rows / M columns are exact zeros and contribute nothing.)
    # TODO(synk): E[y^2]-E[y]^2 can cancel for |mean| >> std at very large M;
    # switch to shifted/Welford-style partials if that regime matters.
    s = jnp.sum(stats, axis=(0, 1))                     # (cp, 2), f32
    mean = s[:, 0] / m_total
    var = jnp.maximum(s[:, 1] / m_total - mean * mean, 0.0)   # biased variance
    gamma_p = jnp.pad(gamma.astype(jnp.float32), (0, cp - cout))
    beta_p = jnp.pad(beta.astype(jnp.float32), (0, cp - cout))
    scale = gamma_p * jax.lax.rsqrt(var + EPS)
    shift = beta_p - mean * scale

    # ---- pass 2: normalize + LeakyReLU, stored directly in NCHW order ----
    out_shape = jax.ShapeDtypeStruct((n, cp, m_img_p), x.dtype)
    if store_y:
        out_p = pl.pallas_call(
            functools.partial(_bn_lrelu_kernel, slope=slope),
            out_shape=out_shape,
            grid=grid,
            in_specs=[vec_spec, vec_spec, y_spec],
            out_specs=y_spec,
            compiler_params=cparams,
        )(scale.reshape(cp, 1), shift.reshape(cp, 1), y)
    else:
        out_p = pl.pallas_call(
            functools.partial(_conv_bn_lrelu_kernel, slope=slope),
            out_shape=out_shape,
            grid=grid,
            in_specs=[w_spec, p_spec, vec_spec, vec_spec],
            out_specs=y_spec,
            compiler_params=cparams,
        )(w_p, patches_p, scale.reshape(cp, 1), shift.reshape(cp, 1))

    # Already (N, C, OH*OW): only strip channel/column padding, no transpose.
    return out_p[:, :cout, :m_img].reshape(n, cout, oh, ow)


# ------------------------------ reference -------------------------------

def conv_block_reference(x, weight, bias, gamma, beta, *, stride=2, padding=1,
                         slope=0.2):
    y = jax.lax.conv_general_dilated(
        x, weight, (stride, stride), [(padding, padding), (padding, padding)],
        dimension_numbers=("NCHW", "OIHW", "NCHW"))
    y = y + bias[None, :, None, None]
    mean = y.mean(axis=(0, 2, 3), keepdims=True)
    var = ((y - mean) ** 2).mean(axis=(0, 2, 3), keepdims=True)
    y_hat = (y - mean) * jax.lax.rsqrt(var + EPS)
    z = gamma[None, :, None, None] * y_hat + beta[None, :, None, None]
    return jnp.where(z >= 0, z, slope * z)


if __name__ == "__main__":
    key = jax.random.PRNGKey(0)
    k_x, k_w, k_b, k_g, k_beta = jax.random.split(key, 5)

    N, CIN, H, W = 2, 4, 16, 16
    COUT, KSZ = 8, 3

    x = jax.random.normal(k_x, (N, CIN, H, W), jnp.float32)
    weight = jax.random.normal(k_w, (COUT, CIN, KSZ, KSZ), jnp.float32) * 0.1
    bias = jax.random.normal(k_b, (COUT,), jnp.float32) * 0.1
    gamma = jax.random.normal(k_g, (COUT,), jnp.float32) * 0.5 + 1.0
    beta = jax.random.normal(k_beta, (COUT,), jnp.float32) * 0.1

    ref = conv_block_reference(x, weight, bias, gamma, beta)

    # f32 MXU path (store-y): tight check against the reference.
    out_f32 = jax.block_until_ready(
        conv_block_forward(x, weight, bias, gamma, beta,
                           compute_dtype=jnp.float32))
    assert out_f32.shape == ref.shape == (N, COUT, H // 2, W // 2)
    assert jnp.allclose(out_f32, ref, atol=1e-4, rtol=1e-4), \
        float(jnp.max(jnp.abs(out_f32 - ref)))

    # f32 recompute path (store_y=False): exercises the fused pass-2 GEMM.
    out_f32_rc = jax.block_until_ready(
        conv_block_forward(x, weight, bias, gamma, beta,
                           compute_dtype=jnp.float32, store_y=False))
    assert jnp.allclose(out_f32_rc, ref, atol=1e-4, rtol=1e-4), \
        float(jnp.max(jnp.abs(out_f32_rc - ref)))

    # bf16 MXU path (default): f32 accumulate, f32 stats/epilogue; only the
    # bf16 input/weight quantization remains -> looser tolerance.
    out_bf16 = jax.block_until_ready(
        conv_block_forward(x, weight, bias, gamma, beta))
    assert out_bf16.shape == ref.shape
    assert jnp.allclose(out_bf16, ref, atol=5e-2, rtol=5e-2), \
        float(jnp.max(jnp.abs(out_bf16 - ref)))

    print("KERNEL_OK")
</pallas_src>

<mosaic_0001>
module attributes {stable_mosaic.version = 11 : i64} {
  func.func @_conv_stats_y_kernel(%arg0: i32, %arg1: i32, %arg2: memref<8x40xf32, #tpu.memory_space<vmem>>, %arg3: memref<1x40x64xf32, #tpu.memory_space<vmem>>, %arg4: memref<1x8x64xf32, #tpu.memory_space<vmem>>, %arg5: memref<1x1x8x2xf32, #tpu.memory_space<vmem>>) attributes {dimension_semantics = [#tpu.dimension_semantics<parallel>, #tpu.dimension_semantics<parallel>], iteration_bounds = array<i64: 2, 1>, scalar_prefetch = 0 : i64, scratch_operands = 0 : i64, tpu.core_type = #tpu.core_type<tc>, window_params = [{pipeline_mode = #tpu.pipeline_mode<synchronous>, transform_indices = @transform_0, window_bounds = array<i64: 8, 40>}, {transform_indices = @transform_1, window_bounds = array<i64: 1, 40, 64>}, {transform_indices = @transform_2, window_bounds = array<i64: 1, 8, 64>}, {transform_indices = @transform_3, window_bounds = array<i64: 1, 1, 8, 2>}]} {
    %c0 = arith.constant 0 : index
    %c0_0 = arith.constant 0 : index
    %0 = vector.load %arg2[%c0, %c0_0] : memref<8x40xf32, #tpu.memory_space<vmem>>, vector<8x40xf32>
    %c0_1 = arith.constant 0 : index
    %c0_2 = arith.constant 0 : index
    %c0_3 = arith.constant 0 : index
    %1 = vector.load %arg3[%c0_1, %c0_2, %c0_3] : memref<1x40x64xf32, #tpu.memory_space<vmem>>, vector<1x40x64xf32>
    %2 = vector.shape_cast %1 : vector<1x40x64xf32> to vector<40x64xf32>
    %cst = arith.constant dense<0.000000e+00> : vector<8x64xf32>
    %3 = tpu.matmul %0, %2, %cst {dimension_numbers = #tpu.dot_dimension_numbers<[1], [0], [0], [1], [0, 0, 1, 1], [], []>} : vector<8x40xf32>, vector<40x64xf32>, vector<8x64xf32> -> vector<8x64xf32>
    %cst_4 = arith.constant dense<0.000000e+00> : vector<8xf32>
    %4 = vector.multi_reduction <add>, %3, %cst_4 [1] : vector<8x64xf32> to vector<8xf32>
    %5 = vector.shape_cast %4 : vector<8xf32> to vector<8x1xf32>
    %6 = arith.mulf %3, %3 : vector<8x64xf32>
    %cst_5 = arith.constant dense<0.000000e+00> : vector<8xf32>
    %7 = vector.multi_reduction <add>, %6, %cst_5 [1] : vector<8x64xf32> to vector<8xf32>
    %8 = vector.shape_cast %7 : vector<8xf32> to vector<8x1xf32>
    %9 = tpu.concatenate %5, %8 in 1 : vector<8x1xf32>, vector<8x1xf32> -> vector<8x2xf32>
    %c0_6 = arith.constant 0 : index
    %c0_7 = arith.constant 0 : index
    %c0_8 = arith.constant 0 : index
    %c0_9 = arith.constant 0 : index
    %10 = vector.load %arg5[%c0_6, %c0_7, %c0_8, %c0_9] : memref<1x1x8x2xf32, #tpu.memory_space<vmem>>, vector<1x1x8x2xf32>
    %11 = vector.shape_cast %10 : vector<1x1x8x2xf32> to vector<8x2xf32>
    %12 = vector.shape_cast %9 : vector<8x2xf32> to vector<1x1x8x2xf32>
    tpu.vector_store %arg5[%c0_6, %c0_7, %c0_8, %c0_9], %12 {strides = array<i32>} : memref<1x1x8x2xf32, #tpu.memory_space<vmem>>, vector<1x1x8x2xf32>,
    %c0_10 = arith.constant 0 : index
    %c0_11 = arith.constant 0 : index
    %c0_12 = arith.constant 0 : index
    %13 = vector.load %arg4[%c0_10, %c0_11, %c0_12] : memref<1x8x64xf32, #tpu.memory_space<vmem>>, vector<1x8x64xf32>
    %14 = vector.shape_cast %13 : vector<1x8x64xf32> to vector<8x64xf32>
    %15 = vector.shape_cast %3 : vector<8x64xf32> to vector<1x8x64xf32>
    tpu.vector_store %arg4[%c0_10, %c0_11, %c0_12], %15 {strides = array<i32>} : memref<1x8x64xf32, #tpu.memory_space<vmem>>, vector<1x8x64xf32>,
    return
  }
  func.func @transform_0(%arg0: i32, %arg1: i32) -> (i32, i32) {
    %c0_i32 = arith.constant 0 : i32
    %c0_i32_0 = arith.constant 0 : i32
    %c0_i32_1 = arith.constant 0 : i32
    return %c0_i32, %c0_i32_0 : i32, i32
  }
  func.func @transform_1(%arg0: i32, %arg1: i32) -> (i32, i32, i32) {
    %c0_i32 = arith.constant 0 : i32
    %c0_i32_0 = arith.constant 0 : i32
    return %arg0, %c0_i32, %arg1 : i32, i32, i32
  }
  func.func @transform_2(%arg0: i32, %arg1: i32) -> (i32, i32, i32) {
    %c0_i32 = arith.constant 0 : i32
    %c0_i32_0 = arith.constant 0 : i32
    return %arg0, %c0_i32, %arg1 : i32, i32, i32
  }
  func.func @transform_3(%arg0: i32, %arg1: i32) -> (i32, i32, i32, i32) {
    %c0_i32 = arith.constant 0 : i32
    %c0_i32_0 = arith.constant 0 : i32
    %c0_i32_1 = arith.constant 0 : i32
    return %arg0, %arg1, %c0_i32, %c0_i32_0 : i32, i32, i32, i32
  }
}

module attributes {stable_mosaic.version = 11 : i64} {
  func.func @_bn_lrelu_kernel(%arg0: i32, %arg1: i32, %arg2: memref<8x1xf32, #tpu.memory_space<vmem>>, %arg3: memref<8x1xf32, #tpu.memory_space<vmem>>, %arg4: memref<1x8x64xf32, #tpu.memory_space<vmem>>, %arg5: memref<1x8x64xf32, #tpu.memory_space<vmem>>) attributes {dimension_semantics = [#tpu.dimension_semantics<parallel>, #tpu.dimension_semantics<parallel>], iteration_bounds = array<i64: 2, 1>, scalar_prefetch = 0 : i64, scratch_operands = 0 : i64, tpu.core_type = #tpu.core_type<tc>, window_params = [{pipeline_mode = #tpu.pipeline_mode<synchronous>, transform_indices = @transform_0, window_bounds = array<i64: 8, 1>}, {pipeline_mode = #tpu.pipeline_mode<synchronous>, transform_indices = @transform_1, window_bounds = array<i64: 8, 1>}, {transform_indices = @transform_2, window_bounds = array<i64: 1, 8, 64>}, {transform_indices = @transform_3, window_bounds = array<i64: 1, 8, 64>}]} {
    %c0 = arith.constant 0 : index
    %c0_0 = arith.constant 0 : index
    %0 = vector.load %arg2[%c0, %c0_0] : memref<8x1xf32, #tpu.memory_space<vmem>>, vector<8x1xf32>
    %c0_1 = arith.constant 0 : index
    %c0_2 = arith.constant 0 : index
    %c0_3 = arith.constant 0 : index
    %1 = vector.load %arg4[%c0_1, %c0_2, %c0_3] : memref<1x8x64xf32, #tpu.memory_space<vmem>>, vector<1x8x64xf32>
    %2 = vector.shape_cast %1 : vector<1x8x64xf32> to vector<8x64xf32>
    %3 = vector.broadcast %0 : vector<8x1xf32> to vector<8x64xf32>
    %4 = arith.mulf %3, %2 : vector<8x64xf32>
    %c0_4 = arith.constant 0 : index
    %c0_5 = arith.constant 0 : index
    %5 = vector.load %arg3[%c0_4, %c0_5] : memref<8x1xf32, #tpu.memory_space<vmem>>, vector<8x1xf32>
    %6 = vector.broadcast %5 : vector<8x1xf32> to vector<8x64xf32>
    %7 = arith.addf %4, %6 : vector<8x64xf32>
    %cst = arith.constant 0.000000e+00 : f32
    %8 = vector.broadcast %cst : f32 to vector<8x64xf32>
    %9 = arith.cmpf oge, %7, %8 : vector<8x64xf32>
    %cst_6 = arith.constant 2.000000e-01 : f32
    %10 = vector.broadcast %cst_6 : f32 to vector<8x64xf32>
    %11 = arith.mulf %10, %7 : vector<8x64xf32>
    %12 = arith.select %9, %7, %11 : vector<8x64xi1>, vector<8x64xf32>
    %c0_7 = arith.constant 0 : index
    %c0_8 = arith.constant 0 : index
    %c0_9 = arith.constant 0 : index
    %13 = vector.load %arg5[%c0_7, %c0_8, %c0_9] : memref<1x8x64xf32, #tpu.memory_space<vmem>>, vector<1x8x64xf32>
    %14 = vector.shape_cast %13 : vector<1x8x64xf32> to vector<8x64xf32>
    %15 = vector.shape_cast %12 : vector<8x64xf32> to vector<1x8x64xf32>
    tpu.vector_store %arg5[%c0_7, %c0_8, %c0_9], %15 {strides = array<i32>} : memref<1x8x64xf32, #tpu.memory_space<vmem>>, vector<1x8x64xf32>,
    return
  }
  func.func @transform_0(%arg0: i32, %arg1: i32) -> (i32, i32) {
    %c0_i32 = arith.constant 0 : i32
    %c0_i32_0 = arith.constant 0 : i32
    %c0_i32_1 = arith.constant 0 : i32
    return %c0_i32, %c0_i32_0 : i32, i32
  }
  func.func @transform_1(%arg0: i32, %arg1: i32) -> (i32, i32) {
    %c0_i32 = arith.constant 0 : i32
    %c0_i32_0 = arith.constant 0 : i32
    %c0_i32_1 = arith.constant 0 : i32
    return %c0_i32, %c0_i32_0 : i32, i32
  }
  func.func @transform_2(%arg0: i32, %arg1: i32) -> (i32, i32, i32) {
    %c0_i32 = arith.constant 0 : i32
    %c0_i32_0 = arith.constant 0 : i32
    return %arg0, %c0_i32, %arg1 : i32, i32, i32
  }
  func.func @transform_3(%arg0: i32, %arg1: i32) -> (i32, i32, i32) {
    %c0_i32 = arith.constant 0 : i32
    %c0_i32_0 = arith.constant 0 : i32
    return %arg0, %c0_i32, %arg1 : i32, i32, i32
  }
}

</mosaic_0001>

<bundles_post_ra>
// kernel: conv_block_forward.3
= control target key start
LH: loop header
LB: loop body
LE: loop exit
PB: predicated region body
PF: predicated region fallthrough
CT: control target
= control target key end

     0   :  { %s371_s12 = smov 0   ;;  %s373_s13 = smov 0   ;;  %s407_s0 = inlined_call_operand.vmem [shape: f32[8,1], index: 0, kind: input, shape index: {}]   ;;  %s408_s1 = inlined_call_operand.vmem [shape: f32[8,1], index: 1, kind: input, shape index: {}]   ;;  %s409_s2 = inlined_call_operand.vmem [shape: f32[2,8,64], index: 2, kind: input, shape index: {}]   ;;  %s410_s3 = inlined_call_operand.vmem [shape: f32[2,8,64], index: 3, kind: output, shape index: {}]  }
   0x1   :  { %s375_s14 = smov 0  }
   0x2 LB: > { %s25_s15 = sadd.s32 1, %s344_s13  ;;  %p295_p0 = scmp.ge.s32.totalorder %s348_s14, 1  ;;  %s348_s14 = sphi %s375_s14, %s13_s14   ;;  %s344_s13 = sphi %s373_s13, %s412_s13   ;;  %s340_s12 = sphi %s371_s12, %s411_s12  }
   0x3   : > { %p27_p1 = scmp.ge.s32.totalorder %s25_s15, 2  ;;  %p155_p2 = scmp.lt.s32.totalorder %s348_s14, 3 }
   0x5   : > { %s414_s15 = smov (%p27_p1, %s25_s15), 0  ;;  %p156_p3 = pnand %p295_p0, %p155_p2 }
   0x6   : > { %v197_v0 = vld [vmem:[%s407_s0] sm:$0xff] (!%p156_p3)  ;;  %v350_v1 = vmov (!%p156_p3), 0   ;;  %p183_p4 = scmp.lt.s32.totalorder (!%p156_p3), %s340_s12, 1  ;;  %vm215_vm0 = vcmask (!%p156_p3), 523264  }
   0x7   : > { %159 = sbr.rel (%p156_p3) target bundleno = 146 (0x92), region = 32  ;;  %325 = vset.pattern.permute.xlu0 (!%p156_p3), %v350_v1  ;;  %v205_v2 = vld [vmem:[%s408_s1] sm:$0xff] (!%p156_p3) }
   0x8   : > { %201 = vperm.xlu0 (!%p156_p3), %325, %v197_v0  }
   0xc   : > { %208 = vperm.xlu0 (!%p156_p3), %325, %v205_v2  }
   0xe   : > { %s416_s12 = smov (!%p183_p4, %s340_s12), 1 }
   0xf   : > { %s296_s20 = sshll.u32 %s416_s12, 3 }
  0x10   : > { %s189_s23 = scalar_lea.vmem %s409_s2, %s296_s20  ;;  %s196_s26 = scalar_lea.vmem %s410_s3, %s296_s20 }
  0x11   : > { %v198_v4 = vld [vmem:[%s189_s23] sm:$0xff] }
  0x87   : > { %v202_v3 = vpop.permute.xlu0 %201 }
  0x88   : > { %v204_v5 = vmul.f32 %v202_v3, %v198_v4 }
  0x8b   : > { %v209_v6 = vpop.permute.xlu0 %208 }
  0x8c   : > { %v211_v7 = vadd.f32 %v209_v6, %v204_v5 }
  0x8e   : > { %vm212_vm1 = vcmp.ge.f32.partialorder %v211_v7, 0.0  ;;  %v213_v8 = vmul.f32 0.2, %v211_v7 }
  0x90   : > { %v214_v9 = vsel %vm212_vm1, %v211_v7, %v213_v8 }
  0x91   : > { %216 = vst.msk [vmem:[%s196_s26] sm:$0xff] %vm215_vm0, %v214_v9 }
  0x92 PF: > { %s13_s14 = sadd.s32 1, %s348_s14   ;;  %s411_s12 = smov %s344_s13 }
  0x93   : > { %p10_p5 = scmp.ge.s32.totalorder %s13_s14, 4   ;;  %s412_s13 = smov %s414_s15 }
  0x95   :  { %12 = sbr.rel (!%p10_p5) target bundleno = 2 (0x2), region = 62 }

// kernel: conv_block_forward.2
= control target key start
LH: loop header
LB: loop body
LE: loop exit
PB: predicated region body
PF: predicated region fallthrough
CT: control target
= control target key end

     0   :  { %s541_s12 = smov 0   ;;  %s543_s13 = smov 0   ;;  %s584_s0 = inlined_call_operand.vmem [shape: f32[8,40], index: 0, kind: input, shape index: {}]   ;;  %s585_s1 = inlined_call_operand.vmem [shape: f32[2,40,64], index: 1, kind: input, shape index: {}]   ;;  %s586_s2 = inlined_call_operand.vmem [shape: f32[2,8,64], index: 2, kind: output, shape index: {0}]   ;;  %s587_s3 = inlined_call_operand.vmem [shape: f32[2,1,8,2], index: 3, kind: output, shape index: {1}]  }
   0x1   :  { %s545_s14 = smov 0  }
   0x2 LB: > { %s26_s15 = sadd.s32 1, %s512_s13  ;;  %p434_p0 = scmp.ge.s32.totalorder %s516_s14, 1  ;;  %s516_s14 = sphi %s545_s14, %s14_s14   ;;  %s512_s13 = sphi %s543_s13, %s589_s13   ;;  %s508_s12 = sphi %s541_s12, %s588_s12  }
   0x3   : > { %p28_p1 = scmp.ge.s32.totalorder %s26_s15, 2  ;;  %p161_p2 = scmp.lt.s32.totalorder %s516_s14, 3 }
   0x5   : > { %s591_s15 = smov (%p28_p1, %s26_s15), 0  ;;  %p162_p3 = pnand %p434_p0, %p161_p2 }
   0x6   : > { %p197_p4 = scmp.lt.s32.totalorder (!%p162_p3), %s508_s12, 1  ;;  %v518_v0 = vmov (!%p162_p3), 0.0|0.0   ;;  %vm519_vm0 = vmmov (!%p162_p3), 0   ;;  %v520_v1 = vmov (!%p162_p3), 0.0   ;;  %v219_v9 = vld [vmem:[%s584_s0] sm:$0xff] (!%p162_p3)  ;;  %vm225_vm1 = vcmask (!%p162_p3), 326656  }
   0x7   : > { %165 = sbr.rel (%p162_p3) target bundleno = 391 (0x187), region = 28  ;;  %460 = vmatprep.subr.bf16.mxu0 (!%p162_p3), %v518_v0  ;;  %457 = vmatprep.mubr.msk.f32.mxu0 (!%p162_p3), %vm519_vm0, %v520_v1  ;;  %vm299_vm2 = vcmask (!%p162_p3), 523264   ;;  %vm307_vm3 = vcmask (!%p162_p3), 7168   ;;  %vm309_vm4 = vcmask (!%p162_p3), 15360  }
   0xe   : > { %s593_s12 = smov (!%p197_p4, %s508_s12), 1 }
   0xf   : > { %s466_s16 = smul.u32 40, %s593_s12  ;;  %s436_s22 = sshll.u32 %s593_s12, 3 }
  0x10   : > { %s211_s25 = scalar_lea.vmem %s586_s2, %s436_s22  ;;  %s218_s28 = scalar_lea.vmem %s587_s3, %s436_s22 }
  0x11   : > { %s204_s19 = scalar_lea.vmem %s585_s1, %s466_s16 }
  0x12   : > { %v220_v2 = vld [vmem:[%s204_s19] sm:$0xff]  ;;  %v221_v3 = vld [vmem:[%s204_s19 + $0x8] sm:$0xff]  ;;  %v222_v4 = vld [vmem:[%s204_s19 + $0x10] sm:$0xff] }
  0x13   : > { %v461_v5 = vpack.c.bf16 %v221_v3, %v220_v2  ;;  %v223_v6 = vld [vmem:[%s204_s19 + $0x18] sm:$0xff]  ;;  %v224_v8 = vld [vmem:[%s204_s19 + $0x20] sm:$0xff] }
  0x14   : > { %v464_v7 = vpack.c.bf16 %v223_v6, %v222_v4 }
  0x15   : > { %462 = vmatpush3.bf16.msra.mxu0 %v461_v5 }
  0x16   : > { %463 = vmatprep.subr.bf16.mxu0 %v518_v0 }
  0x19   : > { %465 = vmatpush3.bf16.msra.mxu0 %v464_v7 }
  0x1a   : > { %455 = vmatprep.subr.mxu0 %v520_v1 }
  0x1d   : > { %456 = vmatpush3.msra.mxu0 %v224_v8 }
  0x1e   : > { %458 = vmatmul.mubr.msk.f32.vlgmr.msra.gmra.mrb[0].mxu0 %vm225_vm1, %v219_v9 }
  0xf1   : > { %v295_v10 = vpop.f32.mrb[0].mxu0 }
  0xf2   : > { %v459_v11 = vpop.f32.mrb[1].mxu0  ;;  %v300_v12 = vsel %vm299_vm2, %v295_v10, 0.0  ;;  %311 = vst.msk [vmem:[%s211_s25] sm:$0xff] %vm299_vm2, %v295_v10  ;;  %v303_v13 = vmul.f32 %v295_v10, %v295_v10 }
  0xf3   : > { %301 = vadd.xlane.f32.xlu0 %v300_v12 }
  0xf4   : > { %v304_v14 = vsel %vm299_vm2, %v303_v13, 0.0 }
  0xf7   : > { %305 = vadd.xlane.f32.xlu0 %v304_v14 }
 0x180   : > { %v302_v15 = vpop.xlane.xlu0 %301 }
 0x184   : > { %v306_v16 = vpop.xlane.xlu0 %305 }
 0x185   : > { %v308_v17 = vsel %vm307_vm3, %v302_v15, %v306_v16 }
 0x186   : > { %310 = vst.msk [vmem:[%s218_s28] sm:$0xff] %vm309_vm4, %v308_v17 }
 0x187 PF: > { %s14_s14 = sadd.s32 1, %s516_s14   ;;  %s588_s12 = smov %s512_s13 }
 0x188   : > { %p11_p5 = scmp.ge.s32.totalorder %s14_s14, 4   ;;  %s589_s13 = smov %s591_s15 }
 0x18a   :  { %13 = sbr.rel (!%p11_p5) target bundleno = 2 (0x2), region = 70 }

</bundles_post_ra>
